<compile_context>
chip_gen: v7x
topology: tpu7x:2x2x1
jax: 0.10.0
libtpu: 0.0.40
codegen_flags: <defaults>
</compile_context>

<pallas_src>
import jax
import jax.numpy as jnp
from jax.experimental import pallas as pl
from jax.experimental.pallas import tpu as pltpu

HIDDEN_SIZE = 2
INPUT_SIZE = 5
NUM_CLASSES = 1
NUM_LAYERS = 1
FC1_SIZE = 128
SEQ_LEN = 8
BATCH = 2


def lstm1_kernel(x_ref, rec_ref, head_ref, o_ref):
    # x_ref    : (T*B, I)    time-major flattened input (row t*B + b)
    # rec_ref  : (I+H+1, 4H) packed [W_ih^T; W_hh^T; bias], gate cols (i,f,o,g),
    #                        i/f/o columns pre-scaled by 0.5 (single-tanh trick)
    # head_ref : (H+3, 128)  packed [W1^T (H rows); b1; w2; b2-row]
    # o_ref    : (B, num_classes)
    TB, I = x_ref.shape
    B = o_ref.shape[0]
    T = TB // B
    G = rec_ref.shape[1]          # 4H
    H = G // 4
    F = head_ref.shape[1]         # 128

    rec = rec_ref[...]
    wih = rec[0:I, :]             # (I, 4H)
    whh = rec[I:I + H, :]         # (H, 4H)
    bias = rec[I + H:I + H + 1, :]  # (1, 4H)

    # Hoisted input projection: one MXU matmul for every timestep, off the
    # serial h->c->h dependency chain.
    gx = (jnp.dot(x_ref[...], wih, preferred_element_type=jnp.float32)
          + bias)                                                # (T*B, 4H)

    # Hoist the loop-invariant sublane broadcast of the W_hh rows.
    whh_rows = [jnp.broadcast_to(whh[k:k + 1, :], (B, G)) for k in range(H)]

    h = jnp.zeros((B, H), jnp.float32)
    c = jnp.zeros((B, H), jnp.float32)

    # Static unroll of the T=8 recurrence (LLO cross-step visibility).
    for t in range(T):
        gates = gx[t * B:(t + 1) * B, :]                         # (B, 4H)
        # h @ W_hh on the VPU: H=2 -> two broadcast-mul + add.
        for k in range(H):
            gates = gates + h[:, k:k + 1] * whh_rows[k]
        # Single EUP push per step: i/f/o pre-scaled by 0.5 at pack time, so
        # sigmoid(z) = 0.5*(tanh(z/2)+1) and tanh(g) come from one tanh.
        tg = jnp.tanh(gates)                                     # (B, 4H)
        sig = 0.5 * (tg[:, 0:3 * H] + 1.0)                       # [i | f | o]
        g = tg[:, 3 * H:4 * H]
        i_g = sig[:, 0:H]
        f_g = sig[:, H:2 * H]
        o_g = sig[:, 2 * H:3 * H]
        c = f_g * c + i_g * g
        h = o_g * jnp.tanh(c)

    # Head: hn.view(-1, H) -> ReLU -> fc_1 -> ReLU -> fc, all on the VPU.
    head = head_ref[...]
    relu_h = jnp.maximum(h, 0.0)
    out = relu_h[:, 0:1] * head[0:1, :]                          # fc_1 as FMAs
    for k in range(1, H):
        out = out + relu_h[:, k:k + 1] * head[k:k + 1, :]
    out = out + head[H:H + 1, :]                                 # + b1
    out = jnp.maximum(out, 0.0)                                  # (B, 128)
    w2row = head[H + 1:H + 2, :]                                 # (1, 128)
    b2 = head[H + 2:H + 3, 0:1]                                  # (1, 1)
    out2 = jnp.sum(out * w2row, axis=-1, keepdims=True) + b2     # (B, 1)
    o_ref[...] = out2.astype(o_ref.dtype)


def init_params(key):
    """Deterministic params matching the PyTorch module's shapes / default init style."""
    ks = jax.random.split(key, 8)
    klstm = 1.0 / jnp.sqrt(HIDDEN_SIZE)
    kfc1 = 1.0 / jnp.sqrt(HIDDEN_SIZE)
    kfc = 1.0 / jnp.sqrt(FC1_SIZE)
    u = lambda k, shape, bound: jax.random.uniform(k, shape, jnp.float32, -bound, bound)
    w_ih = u(ks[0], (4 * HIDDEN_SIZE, INPUT_SIZE), klstm)   # rows: i, f, g, o
    w_hh = u(ks[1], (4 * HIDDEN_SIZE, HIDDEN_SIZE), klstm)
    b_ih = u(ks[2], (4 * HIDDEN_SIZE,), klstm)
    b_hh = u(ks[3], (4 * HIDDEN_SIZE,), klstm)
    w1 = u(ks[4], (FC1_SIZE, HIDDEN_SIZE), kfc1)
    b1 = u(ks[5], (FC1_SIZE,), kfc1)
    w2 = u(ks[6], (NUM_CLASSES, FC1_SIZE), kfc)
    b2 = u(ks[7], (NUM_CLASSES,), kfc)
    return (w_ih, w_hh, b_ih, b_hh, w1, b1, w2, b2)


def pack_params(params):
    """ONE-TIME packing (model-load time). Builds the 2 constant kernel slabs."""
    w_ih, w_hh, b_ih, b_hh, w1, b1, w2, b2 = params
    H = HIDDEN_SIZE
    ar = jnp.arange(H)
    # Gate column permutation i,f,g,o -> i,f,o,g (sigmoid gates contiguous, tanh last).
    perm = jnp.concatenate([ar, ar + H, ar + 3 * H, ar + 2 * H])
    # 0.5 pre-scale on i/f/o columns so one tanh yields both sigmoid and tanh gates.
    scale = jnp.concatenate([jnp.full((3 * H,), 0.5, jnp.float32),
                             jnp.ones((H,), jnp.float32)])
    wih_t = w_ih.T[:, perm] * scale                              # (I, 4H)
    whh_t = w_hh.T[:, perm] * scale                              # (H, 4H)
    b = ((b_ih + b_hh)[perm] * scale).reshape(1, -1)             # (1, 4H)
    rec = jnp.concatenate([wih_t, whh_t, b], axis=0).astype(jnp.float32)

    head = jnp.concatenate([
        w1.T,                                                    # (H, 128)
        b1.reshape(1, -1),                                       # (1, 128)
        w2.reshape(1, -1),                                       # (1, 128)
        jnp.full((1, FC1_SIZE), b2[0], jnp.float32),             # (1, 128) b2 replicated
    ], axis=0).astype(jnp.float32)                               # (H+3, 128)
    return rec, head


def lstm1_forward(x, packed):
    """x: (B, T, I) batch_first float32, like the PyTorch module. Returns (B, num_classes)."""
    rec, head = packed
    B, T, I = x.shape
    # Time-major, flattened so one matmul projects every timestep at once.
    x_tm = jnp.transpose(x, (1, 0, 2)).reshape(T * B, I).astype(jnp.float32)

    vmem = pl.BlockSpec(memory_space=pltpu.MemorySpace.VMEM)
    # Problem is a few KB -> whole thing resident in VMEM, single grid point,
    # 3 input DMAs + 1 output DMA.
    # TODO(synk): for large batches, add a batch grid axis (block rows a multiple
    # of 8) with dimension_semantics=("parallel",) to use v7x's two TensorCores,
    # and make the output lane-dense (last dim >= 128) at that point.
    return pl.pallas_call(
        lstm1_kernel,
        out_shape=jax.ShapeDtypeStruct((B, NUM_CLASSES), jnp.float32),
        in_specs=[vmem, vmem, vmem],
        out_specs=vmem,
    )(x_tm, rec, head)


def lstm1_reference(x, params):
    """Pure-JAX reference with PyTorch LSTM semantics (gate order i,f,g,o)."""
    w_ih, w_hh, b_ih, b_hh, w1, b1, w2, b2 = params
    B, T, _ = x.shape
    H = HIDDEN_SIZE
    h = jnp.zeros((B, H), jnp.float32)
    c = jnp.zeros((B, H), jnp.float32)
    for t in range(T):
        gates = x[:, t, :] @ w_ih.T + h @ w_hh.T + b_ih + b_hh
        i = jax.nn.sigmoid(gates[:, 0:H])
        f = jax.nn.sigmoid(gates[:, H:2 * H])
        g = jnp.tanh(gates[:, 2 * H:3 * H])
        o = jax.nn.sigmoid(gates[:, 3 * H:4 * H])
        c = f * c + i * g
        h = o * jnp.tanh(c)
    out = jnp.maximum(h, 0.0)
    out = jnp.maximum(out @ w1.T + b1, 0.0)
    return out @ w2.T + b2


if __name__ == "__main__":
    key = jax.random.PRNGKey(0)
    kx, kp = jax.random.split(key)
    x = jax.random.normal(kx, (BATCH, SEQ_LEN, INPUT_SIZE), jnp.float32)
    params = init_params(kp)

    packed = jax.tree_util.tree_map(jax.block_until_ready, pack_params(params))
    fwd = jax.jit(lstm1_forward)

    out = fwd(x, packed)
    out = jax.block_until_ready(out)

    ref = lstm1_reference(x, params)
    assert out.shape == (BATCH, NUM_CLASSES), out.shape
    assert jnp.allclose(out, ref, rtol=1e-4, atol=1e-5), (out, ref)
    print("KERNEL_OK")
</pallas_src>

<mosaic_0001>
module attributes {stable_mosaic.version = 11 : i64} {
  func.func @lstm1_kernel(%arg0: memref<16x5xf32, #tpu.memory_space<vmem>>, %arg1: memref<8x8xf32, #tpu.memory_space<vmem>>, %arg2: memref<5x128xf32, #tpu.memory_space<vmem>>, %arg3: memref<2x1xf32, #tpu.memory_space<vmem>>) attributes {dimension_semantics = [], scalar_prefetch = 0 : i64, scratch_operands = 0 : i64, tpu.core_type = #tpu.core_type<tc>} {
    %c0 = arith.constant 0 : index
    %c0_0 = arith.constant 0 : index
    %0 = vector.load %arg1[%c0, %c0_0] : memref<8x8xf32, #tpu.memory_space<vmem>>, vector<8x8xf32>
    %1 = vector.extract_strided_slice %0 {offsets = [0, 0], sizes = [5, 8], strides = [1, 1]} : vector<8x8xf32> to vector<5x8xf32>
    %2 = vector.extract_strided_slice %0 {offsets = [5, 0], sizes = [2, 8], strides = [1, 1]} : vector<8x8xf32> to vector<2x8xf32>
    %3 = vector.extract_strided_slice %0 {offsets = [7, 0], sizes = [1, 8], strides = [1, 1]} : vector<8x8xf32> to vector<1x8xf32>
    %c0_1 = arith.constant 0 : index
    %c0_2 = arith.constant 0 : index
    %4 = vector.load %arg0[%c0_1, %c0_2] : memref<16x5xf32, #tpu.memory_space<vmem>>, vector<16x5xf32>
    %cst = arith.constant dense<0.000000e+00> : vector<16x8xf32>
    %5 = tpu.matmul %4, %1, %cst {dimension_numbers = #tpu.dot_dimension_numbers<[1], [0], [0], [1], [0, 0, 1, 1], [], []>} : vector<16x5xf32>, vector<5x8xf32>, vector<16x8xf32> -> vector<16x8xf32>
    %6 = vector.broadcast %3 : vector<1x8xf32> to vector<16x8xf32>
    %7 = arith.addf %5, %6 : vector<16x8xf32>
    %8 = vector.extract_strided_slice %2 {offsets = [0, 0], sizes = [1, 8], strides = [1, 1]} : vector<2x8xf32> to vector<1x8xf32>
    %9 = vector.shape_cast %8 : vector<1x8xf32> to vector<1x8xf32>
    %10 = vector.broadcast %9 : vector<1x8xf32> to vector<2x8xf32>
    %11 = vector.extract_strided_slice %2 {offsets = [1, 0], sizes = [1, 8], strides = [1, 1]} : vector<2x8xf32> to vector<1x8xf32>
    %12 = vector.shape_cast %11 : vector<1x8xf32> to vector<1x8xf32>
    %13 = vector.broadcast %12 : vector<1x8xf32> to vector<2x8xf32>
    %cst_3 = arith.constant 0.000000e+00 : f32
    %14 = vector.broadcast %cst_3 : f32 to vector<2x2xf32>
    %cst_4 = arith.constant 0.000000e+00 : f32
    %15 = vector.broadcast %cst_4 : f32 to vector<2x2xf32>
    %16 = vector.extract_strided_slice %7 {offsets = [0, 0], sizes = [2, 8], strides = [1, 1]} : vector<16x8xf32> to vector<2x8xf32>
    %17 = vector.extract_strided_slice %14 {offsets = [0, 0], sizes = [2, 1], strides = [1, 1]} : vector<2x2xf32> to vector<2x1xf32>
    %18 = vector.broadcast %17 : vector<2x1xf32> to vector<2x8xf32>
    %19 = arith.mulf %18, %10 : vector<2x8xf32>
    %20 = arith.addf %16, %19 : vector<2x8xf32>
    %21 = vector.extract_strided_slice %14 {offsets = [0, 1], sizes = [2, 1], strides = [1, 1]} : vector<2x2xf32> to vector<2x1xf32>
    %22 = vector.broadcast %21 : vector<2x1xf32> to vector<2x8xf32>
    %23 = arith.mulf %22, %13 : vector<2x8xf32>
    %24 = arith.addf %20, %23 : vector<2x8xf32>
    %25 = math.tanh %24 : vector<2x8xf32>
    %26 = vector.extract_strided_slice %25 {offsets = [0, 0], sizes = [2, 6], strides = [1, 1]} : vector<2x8xf32> to vector<2x6xf32>
    %cst_5 = arith.constant 1.000000e+00 : f32
    %27 = vector.broadcast %cst_5 : f32 to vector<2x6xf32>
    %28 = arith.addf %26, %27 : vector<2x6xf32>
    %cst_6 = arith.constant 5.000000e-01 : f32
    %29 = vector.broadcast %cst_6 : f32 to vector<2x6xf32>
    %30 = arith.mulf %29, %28 : vector<2x6xf32>
    %31 = vector.extract_strided_slice %25 {offsets = [0, 6], sizes = [2, 2], strides = [1, 1]} : vector<2x8xf32> to vector<2x2xf32>
    %32 = vector.extract_strided_slice %30 {offsets = [0, 0], sizes = [2, 2], strides = [1, 1]} : vector<2x6xf32> to vector<2x2xf32>
    %33 = vector.extract_strided_slice %30 {offsets = [0, 2], sizes = [2, 2], strides = [1, 1]} : vector<2x6xf32> to vector<2x2xf32>
    %34 = vector.extract_strided_slice %30 {offsets = [0, 4], sizes = [2, 2], strides = [1, 1]} : vector<2x6xf32> to vector<2x2xf32>
    %35 = arith.mulf %33, %15 : vector<2x2xf32>
    %36 = arith.mulf %32, %31 : vector<2x2xf32>
    %37 = arith.addf %35, %36 : vector<2x2xf32>
    %38 = math.tanh %37 : vector<2x2xf32>
    %39 = arith.mulf %34, %38 : vector<2x2xf32>
    %40 = vector.extract_strided_slice %7 {offsets = [2, 0], sizes = [2, 8], strides = [1, 1]} : vector<16x8xf32> to vector<2x8xf32>
    %41 = vector.extract_strided_slice %39 {offsets = [0, 0], sizes = [2, 1], strides = [1, 1]} : vector<2x2xf32> to vector<2x1xf32>
    %42 = vector.broadcast %41 : vector<2x1xf32> to vector<2x8xf32>
    %43 = arith.mulf %42, %10 : vector<2x8xf32>
    %44 = arith.addf %40, %43 : vector<2x8xf32>
    %45 = vector.extract_strided_slice %39 {offsets = [0, 1], sizes = [2, 1], strides = [1, 1]} : vector<2x2xf32> to vector<2x1xf32>
    %46 = vector.broadcast %45 : vector<2x1xf32> to vector<2x8xf32>
    %47 = arith.mulf %46, %13 : vector<2x8xf32>
    %48 = arith.addf %44, %47 : vector<2x8xf32>
    %49 = math.tanh %48 : vector<2x8xf32>
    %50 = vector.extract_strided_slice %49 {offsets = [0, 0], sizes = [2, 6], strides = [1, 1]} : vector<2x8xf32> to vector<2x6xf32>
    %cst_7 = arith.constant 1.000000e+00 : f32
    %51 = vector.broadcast %cst_7 : f32 to vector<2x6xf32>
    %52 = arith.addf %50, %51 : vector<2x6xf32>
    %cst_8 = arith.constant 5.000000e-01 : f32
    %53 = vector.broadcast %cst_8 : f32 to vector<2x6xf32>
    %54 = arith.mulf %53, %52 : vector<2x6xf32>
    %55 = vector.extract_strided_slice %49 {offsets = [0, 6], sizes = [2, 2], strides = [1, 1]} : vector<2x8xf32> to vector<2x2xf32>
    %56 = vector.extract_strided_slice %54 {offsets = [0, 0], sizes = [2, 2], strides = [1, 1]} : vector<2x6xf32> to vector<2x2xf32>
    %57 = vector.extract_strided_slice %54 {offsets = [0, 2], sizes = [2, 2], strides = [1, 1]} : vector<2x6xf32> to vector<2x2xf32>
    %58 = vector.extract_strided_slice %54 {offsets = [0, 4], sizes = [2, 2], strides = [1, 1]} : vector<2x6xf32> to vector<2x2xf32>
    %59 = arith.mulf %57, %37 : vector<2x2xf32>
    %60 = arith.mulf %56, %55 : vector<2x2xf32>
    %61 = arith.addf %59, %60 : vector<2x2xf32>
    %62 = math.tanh %61 : vector<2x2xf32>
    %63 = arith.mulf %58, %62 : vector<2x2xf32>
    %64 = vector.extract_strided_slice %7 {offsets = [4, 0], sizes = [2, 8], strides = [1, 1]} : vector<16x8xf32> to vector<2x8xf32>
    %65 = vector.extract_strided_slice %63 {offsets = [0, 0], sizes = [2, 1], strides = [1, 1]} : vector<2x2xf32> to vector<2x1xf32>
    %66 = vector.broadcast %65 : vector<2x1xf32> to vector<2x8xf32>
    %67 = arith.mulf %66, %10 : vector<2x8xf32>
    %68 = arith.addf %64, %67 : vector<2x8xf32>
    %69 = vector.extract_strided_slice %63 {offsets = [0, 1], sizes = [2, 1], strides = [1, 1]} : vector<2x2xf32> to vector<2x1xf32>
    %70 = vector.broadcast %69 : vector<2x1xf32> to vector<2x8xf32>
    %71 = arith.mulf %70, %13 : vector<2x8xf32>
    %72 = arith.addf %68, %71 : vector<2x8xf32>
    %73 = math.tanh %72 : vector<2x8xf32>
    %74 = vector.extract_strided_slice %73 {offsets = [0, 0], sizes = [2, 6], strides = [1, 1]} : vector<2x8xf32> to vector<2x6xf32>
    %cst_9 = arith.constant 1.000000e+00 : f32
    %75 = vector.broadcast %cst_9 : f32 to vector<2x6xf32>
    %76 = arith.addf %74, %75 : vector<2x6xf32>
    %cst_10 = arith.constant 5.000000e-01 : f32
    %77 = vector.broadcast %cst_10 : f32 to vector<2x6xf32>
    %78 = arith.mulf %77, %76 : vector<2x6xf32>
    %79 = vector.extract_strided_slice %73 {offsets = [0, 6], sizes = [2, 2], strides = [1, 1]} : vector<2x8xf32> to vector<2x2xf32>
    %80 = vector.extract_strided_slice %78 {offsets = [0, 0], sizes = [2, 2], strides = [1, 1]} : vector<2x6xf32> to vector<2x2xf32>
    %81 = vector.extract_strided_slice %78 {offsets = [0, 2], sizes = [2, 2], strides = [1, 1]} : vector<2x6xf32> to vector<2x2xf32>
    %82 = vector.extract_strided_slice %78 {offsets = [0, 4], sizes = [2, 2], strides = [1, 1]} : vector<2x6xf32> to vector<2x2xf32>
    %83 = arith.mulf %81, %61 : vector<2x2xf32>
    %84 = arith.mulf %80, %79 : vector<2x2xf32>
    %85 = arith.addf %83, %84 : vector<2x2xf32>
    %86 = math.tanh %85 : vector<2x2xf32>
    %87 = arith.mulf %82, %86 : vector<2x2xf32>
    %88 = vector.extract_strided_slice %7 {offsets = [6, 0], sizes = [2, 8], strides = [1, 1]} : vector<16x8xf32> to vector<2x8xf32>
    %89 = vector.extract_strided_slice %87 {offsets = [0, 0], sizes = [2, 1], strides = [1, 1]} : vector<2x2xf32> to vector<2x1xf32>
    %90 = vector.broadcast %89 : vector<2x1xf32> to vector<2x8xf32>
    %91 = arith.mulf %90, %10 : vector<2x8xf32>
    %92 = arith.addf %88, %91 : vector<2x8xf32>
    %93 = vector.extract_strided_slice %87 {offsets = [0, 1], sizes = [2, 1], strides = [1, 1]} : vector<2x2xf32> to vector<2x1xf32>
    %94 = vector.broadcast %93 : vector<2x1xf32> to vector<2x8xf32>
    %95 = arith.mulf %94, %13 : vector<2x8xf32>
    %96 = arith.addf %92, %95 : vector<2x8xf32>
    %97 = math.tanh %96 : vector<2x8xf32>
    %98 = vector.extract_strided_slice %97 {offsets = [0, 0], sizes = [2, 6], strides = [1, 1]} : vector<2x8xf32> to vector<2x6xf32>
    %cst_11 = arith.constant 1.000000e+00 : f32
    %99 = vector.broadcast %cst_11 : f32 to vector<2x6xf32>
    %100 = arith.addf %98, %99 : vector<2x6xf32>
    %cst_12 = arith.constant 5.000000e-01 : f32
    %101 = vector.broadcast %cst_12 : f32 to vector<2x6xf32>
    %102 = arith.mulf %101, %100 : vector<2x6xf32>
    %103 = vector.extract_strided_slice %97 {offsets = [0, 6], sizes = [2, 2], strides = [1, 1]} : vector<2x8xf32> to vector<2x2xf32>
    %104 = vector.extract_strided_slice %102 {offsets = [0, 0], sizes = [2, 2], strides = [1, 1]} : vector<2x6xf32> to vector<2x2xf32>
    %105 = vector.extract_strided_slice %102 {offsets = [0, 2], sizes = [2, 2], strides = [1, 1]} : vector<2x6xf32> to vector<2x2xf32>
    %106 = vector.extract_strided_slice %102 {offsets = [0, 4], sizes = [2, 2], strides = [1, 1]} : vector<2x6xf32> to vector<2x2xf32>
    %107 = arith.mulf %105, %85 : vector<2x2xf32>
    %108 = arith.mulf %104, %103 : vector<2x2xf32>
    %109 = arith.addf %107, %108 : vector<2x2xf32>
    %110 = math.tanh %109 : vector<2x2xf32>
    %111 = arith.mulf %106, %110 : vector<2x2xf32>
    %112 = vector.extract_strided_slice %7 {offsets = [8, 0], sizes = [2, 8], strides = [1, 1]} : vector<16x8xf32> to vector<2x8xf32>
    %113 = vector.extract_strided_slice %111 {offsets = [0, 0], sizes = [2, 1], strides = [1, 1]} : vector<2x2xf32> to vector<2x1xf32>
    %114 = vector.broadcast %113 : vector<2x1xf32> to vector<2x8xf32>
    %115 = arith.mulf %114, %10 : vector<2x8xf32>
    %116 = arith.addf %112, %115 : vector<2x8xf32>
    %117 = vector.extract_strided_slice %111 {offsets = [0, 1], sizes = [2, 1], strides = [1, 1]} : vector<2x2xf32> to vector<2x1xf32>
    %118 = vector.broadcast %117 : vector<2x1xf32> to vector<2x8xf32>
    %119 = arith.mulf %118, %13 : vector<2x8xf32>
    %120 = arith.addf %116, %119 : vector<2x8xf32>
    %121 = math.tanh %120 : vector<2x8xf32>
    %122 = vector.extract_strided_slice %121 {offsets = [0, 0], sizes = [2, 6], strides = [1, 1]} : vector<2x8xf32> to vector<2x6xf32>
    %cst_13 = arith.constant 1.000000e+00 : f32
    %123 = vector.broadcast %cst_13 : f32 to vector<2x6xf32>
    %124 = arith.addf %122, %123 : vector<2x6xf32>
    %cst_14 = arith.constant 5.000000e-01 : f32
    %125 = vector.broadcast %cst_14 : f32 to vector<2x6xf32>
    %126 = arith.mulf %125, %124 : vector<2x6xf32>
    %127 = vector.extract_strided_slice %121 {offsets = [0, 6], sizes = [2, 2], strides = [1, 1]} : vector<2x8xf32> to vector<2x2xf32>
    %128 = vector.extract_strided_slice %126 {offsets = [0, 0], sizes = [2, 2], strides = [1, 1]} : vector<2x6xf32> to vector<2x2xf32>
    %129 = vector.extract_strided_slice %126 {offsets = [0, 2], sizes = [2, 2], strides = [1, 1]} : vector<2x6xf32> to vector<2x2xf32>
    %130 = vector.extract_strided_slice %126 {offsets = [0, 4], sizes = [2, 2], strides = [1, 1]} : vector<2x6xf32> to vector<2x2xf32>
    %131 = arith.mulf %129, %109 : vector<2x2xf32>
    %132 = arith.mulf %128, %127 : vector<2x2xf32>
    %133 = arith.addf %131, %132 : vector<2x2xf32>
    %134 = math.tanh %133 : vector<2x2xf32>
    %135 = arith.mulf %130, %134 : vector<2x2xf32>
    %136 = vector.extract_strided_slice %7 {offsets = [10, 0], sizes = [2, 8], strides = [1, 1]} : vector<16x8xf32> to vector<2x8xf32>
    %137 = vector.extract_strided_slice %135 {offsets = [0, 0], sizes = [2, 1], strides = [1, 1]} : vector<2x2xf32> to vector<2x1xf32>
    %138 = vector.broadcast %137 : vector<2x1xf32> to vector<2x8xf32>
    %139 = arith.mulf %138, %10 : vector<2x8xf32>
    %140 = arith.addf %136, %139 : vector<2x8xf32>
    %141 = vector.extract_strided_slice %135 {offsets = [0, 1], sizes = [2, 1], strides = [1, 1]} : vector<2x2xf32> to vector<2x1xf32>
    %142 = vector.broadcast %141 : vector<2x1xf32> to vector<2x8xf32>
    %143 = arith.mulf %142, %13 : vector<2x8xf32>
    %144 = arith.addf %140, %143 : vector<2x8xf32>
    %145 = math.tanh %144 : vector<2x8xf32>
    %146 = vector.extract_strided_slice %145 {offsets = [0, 0], sizes = [2, 6], strides = [1, 1]} : vector<2x8xf32> to vector<2x6xf32>
    %cst_15 = arith.constant 1.000000e+00 : f32
    %147 = vector.broadcast %cst_15 : f32 to vector<2x6xf32>
    %148 = arith.addf %146, %147 : vector<2x6xf32>
    %cst_16 = arith.constant 5.000000e-01 : f32
    %149 = vector.broadcast %cst_16 : f32 to vector<2x6xf32>
    %150 = arith.mulf %149, %148 : vector<2x6xf32>
    %151 = vector.extract_strided_slice %145 {offsets = [0, 6], sizes = [2, 2], strides = [1, 1]} : vector<2x8xf32> to vector<2x2xf32>
    %152 = vector.extract_strided_slice %150 {offsets = [0, 0], sizes = [2, 2], strides = [1, 1]} : vector<2x6xf32> to vector<2x2xf32>
    %153 = vector.extract_strided_slice %150 {offsets = [0, 2], sizes = [2, 2], strides = [1, 1]} : vector<2x6xf32> to vector<2x2xf32>
    %154 = vector.extract_strided_slice %150 {offsets = [0, 4], sizes = [2, 2], strides = [1, 1]} : vector<2x6xf32> to vector<2x2xf32>
    %155 = arith.mulf %153, %133 : vector<2x2xf32>
    %156 = arith.mulf %152, %151 : vector<2x2xf32>
    %157 = arith.addf %155, %156 : vector<2x2xf32>
    %158 = math.tanh %157 : vector<2x2xf32>
    %159 = arith.mulf %154, %158 : vector<2x2xf32>
    %160 = vector.extract_strided_slice %7 {offsets = [12, 0], sizes = [2, 8], strides = [1, 1]} : vector<16x8xf32> to vector<2x8xf32>
    %161 = vector.extract_strided_slice %159 {offsets = [0, 0], sizes = [2, 1], strides = [1, 1]} : vector<2x2xf32> to vector<2x1xf32>
    %162 = vector.broadcast %161 : vector<2x1xf32> to vector<2x8xf32>
    %163 = arith.mulf %162, %10 : vector<2x8xf32>
    %164 = arith.addf %160, %163 : vector<2x8xf32>
    %165 = vector.extract_strided_slice %159 {offsets = [0, 1], sizes = [2, 1], strides = [1, 1]} : vector<2x2xf32> to vector<2x1xf32>
    %166 = vector.broadcast %165 : vector<2x1xf32> to vector<2x8xf32>
    %167 = arith.mulf %166, %13 : vector<2x8xf32>
    %168 = arith.addf %164, %167 : vector<2x8xf32>
    %169 = math.tanh %168 : vector<2x8xf32>
    %170 = vector.extract_strided_slice %169 {offsets = [0, 0], sizes = [2, 6], strides = [1, 1]} : vector<2x8xf32> to vector<2x6xf32>
    %cst_17 = arith.constant 1.000000e+00 : f32
    %171 = vector.broadcast %cst_17 : f32 to vector<2x6xf32>
    %172 = arith.addf %170, %171 : vector<2x6xf32>
    %cst_18 = arith.constant 5.000000e-01 : f32
    %173 = vector.broadcast %cst_18 : f32 to vector<2x6xf32>
    %174 = arith.mulf %173, %172 : vector<2x6xf32>
    %175 = vector.extract_strided_slice %169 {offsets = [0, 6], sizes = [2, 2], strides = [1, 1]} : vector<2x8xf32> to vector<2x2xf32>
    %176 = vector.extract_strided_slice %174 {offsets = [0, 0], sizes = [2, 2], strides = [1, 1]} : vector<2x6xf32> to vector<2x2xf32>
    %177 = vector.extract_strided_slice %174 {offsets = [0, 2], sizes = [2, 2], strides = [1, 1]} : vector<2x6xf32> to vector<2x2xf32>
    %178 = vector.extract_strided_slice %174 {offsets = [0, 4], sizes = [2, 2], strides = [1, 1]} : vector<2x6xf32> to vector<2x2xf32>
    %179 = arith.mulf %177, %157 : vector<2x2xf32>
    %180 = arith.mulf %176, %175 : vector<2x2xf32>
    %181 = arith.addf %179, %180 : vector<2x2xf32>
    %182 = math.tanh %181 : vector<2x2xf32>
    %183 = arith.mulf %178, %182 : vector<2x2xf32>
    %184 = vector.extract_strided_slice %7 {offsets = [14, 0], sizes = [2, 8], strides = [1, 1]} : vector<16x8xf32> to vector<2x8xf32>
    %185 = vector.extract_strided_slice %183 {offsets = [0, 0], sizes = [2, 1], strides = [1, 1]} : vector<2x2xf32> to vector<2x1xf32>
    %186 = vector.broadcast %185 : vector<2x1xf32> to vector<2x8xf32>
    %187 = arith.mulf %186, %10 : vector<2x8xf32>
    %188 = arith.addf %184, %187 : vector<2x8xf32>
    %189 = vector.extract_strided_slice %183 {offsets = [0, 1], sizes = [2, 1], strides = [1, 1]} : vector<2x2xf32> to vector<2x1xf32>
    %190 = vector.broadcast %189 : vector<2x1xf32> to vector<2x8xf32>
    %191 = arith.mulf %190, %13 : vector<2x8xf32>
    %192 = arith.addf %188, %191 : vector<2x8xf32>
    %193 = math.tanh %192 : vector<2x8xf32>
    %194 = vector.extract_strided_slice %193 {offsets = [0, 0], sizes = [2, 6], strides = [1, 1]} : vector<2x8xf32> to vector<2x6xf32>
    %cst_19 = arith.constant 1.000000e+00 : f32
    %195 = vector.broadcast %cst_19 : f32 to vector<2x6xf32>
    %196 = arith.addf %194, %195 : vector<2x6xf32>
    %cst_20 = arith.constant 5.000000e-01 : f32
    %197 = vector.broadcast %cst_20 : f32 to vector<2x6xf32>
    %198 = arith.mulf %197, %196 : vector<2x6xf32>
    %199 = vector.extract_strided_slice %193 {offsets = [0, 6], sizes = [2, 2], strides = [1, 1]} : vector<2x8xf32> to vector<2x2xf32>
    %200 = vector.extract_strided_slice %198 {offsets = [0, 0], sizes = [2, 2], strides = [1, 1]} : vector<2x6xf32> to vector<2x2xf32>
    %201 = vector.extract_strided_slice %198 {offsets = [0, 2], sizes = [2, 2], strides = [1, 1]} : vector<2x6xf32> to vector<2x2xf32>
    %202 = vector.extract_strided_slice %198 {offsets = [0, 4], sizes = [2, 2], strides = [1, 1]} : vector<2x6xf32> to vector<2x2xf32>
    %203 = arith.mulf %201, %181 : vector<2x2xf32>
    %204 = arith.mulf %200, %199 : vector<2x2xf32>
    %205 = arith.addf %203, %204 : vector<2x2xf32>
    %206 = math.tanh %205 : vector<2x2xf32>
    %207 = arith.mulf %202, %206 : vector<2x2xf32>
    %c0_21 = arith.constant 0 : index
    %c0_22 = arith.constant 0 : index
    %208 = vector.load %arg2[%c0_21, %c0_22] : memref<5x128xf32, #tpu.memory_space<vmem>>, vector<5x128xf32>
    %cst_23 = arith.constant 0.000000e+00 : f32
    %209 = vector.broadcast %cst_23 : f32 to vector<2x2xf32>
    %210 = arith.maximumf %207, %209 : vector<2x2xf32>
    %211 = vector.extract_strided_slice %210 {offsets = [0, 0], sizes = [2, 1], strides = [1, 1]} : vector<2x2xf32> to vector<2x1xf32>
    %212 = vector.extract_strided_slice %208 {offsets = [0, 0], sizes = [1, 128], strides = [1, 1]} : vector<5x128xf32> to vector<1x128xf32>
    %213 = vector.broadcast %211 : vector<2x1xf32> to vector<2x128xf32>
    %214 = vector.broadcast %212 : vector<1x128xf32> to vector<2x128xf32>
    %215 = arith.mulf %213, %214 : vector<2x128xf32>
    %216 = vector.extract_strided_slice %210 {offsets = [0, 1], sizes = [2, 1], strides = [1, 1]} : vector<2x2xf32> to vector<2x1xf32>
    %217 = vector.extract_strided_slice %208 {offsets = [1, 0], sizes = [1, 128], strides = [1, 1]} : vector<5x128xf32> to vector<1x128xf32>
    %218 = vector.broadcast %216 : vector<2x1xf32> to vector<2x128xf32>
    %219 = vector.broadcast %217 : vector<1x128xf32> to vector<2x128xf32>
    %220 = arith.mulf %218, %219 : vector<2x128xf32>
    %221 = arith.addf %215, %220 : vector<2x128xf32>
    %222 = vector.extract_strided_slice %208 {offsets = [2, 0], sizes = [1, 128], strides = [1, 1]} : vector<5x128xf32> to vector<1x128xf32>
    %223 = vector.broadcast %222 : vector<1x128xf32> to vector<2x128xf32>
    %224 = arith.addf %221, %223 : vector<2x128xf32>
    %cst_24 = arith.constant 0.000000e+00 : f32
    %225 = vector.broadcast %cst_24 : f32 to vector<2x128xf32>
    %226 = arith.maximumf %224, %225 : vector<2x128xf32>
    %227 = vector.extract_strided_slice %208 {offsets = [3, 0], sizes = [1, 128], strides = [1, 1]} : vector<5x128xf32> to vector<1x128xf32>
    %228 = vector.extract_strided_slice %208 {offsets = [4, 0], sizes = [1, 1], strides = [1, 1]} : vector<5x128xf32> to vector<1x1xf32>
    %229 = vector.broadcast %227 : vector<1x128xf32> to vector<2x128xf32>
    %230 = arith.mulf %226, %229 : vector<2x128xf32>
    %cst_25 = arith.constant dense<0.000000e+00> : vector<2xf32>
    %231 = vector.multi_reduction <add>, %230, %cst_25 [1] : vector<2x128xf32> to vector<2xf32>
    %232 = vector.shape_cast %231 : vector<2xf32> to vector<2x1xf32>
    %233 = vector.broadcast %228 : vector<1x1xf32> to vector<2x1xf32>
    %234 = arith.addf %232, %233 : vector<2x1xf32>
    %c0_26 = arith.constant 0 : index
    %c0_27 = arith.constant 0 : index
    %235 = vector.load %arg3[%c0_26, %c0_27] : memref<2x1xf32, #tpu.memory_space<vmem>>, vector<2x1xf32>
    tpu.vector_store %arg3[%c0_26, %c0_27], %234 {strides = array<i32>} : memref<2x1xf32, #tpu.memory_space<vmem>>, vector<2x1xf32>,
    return
  }
}

</mosaic_0001>

<bundles_post_ra>
// kernel: lstm1_forward.1
= control target key start
LH: loop header
LB: loop body
LE: loop exit
PB: predicated region body
PF: predicated region fallthrough
CT: control target
= control target key end

     0   :  { %vm28_vm0 = vcmask 1044480   ;;  %vm21_vm1 = vcmask 39936   ;;  %v17_v3 = vlaneseq  ;;  %v539_v27 = vmov 5   ;;  %s651_s1 = inlined_call_operand.vmem [shape: f32[8,8], index: 1, kind: input, shape index: {}]   ;;  %s652_s0 = inlined_call_operand.vmem [shape: f32[16,5], index: 0, kind: input, shape index: {}]   ;;  %s653_s2 = inlined_call_operand.vmem [shape: f32[5,128], index: 2, kind: input, shape index: {}]   ;;  %s654_s3 = inlined_call_operand.vmem [shape: f32[2,1], index: 3, kind: output, shape index: {}]  }
   0x1   :  { %v14_v0 = vld [vmem:[%s651_s1] sm:$0xff]  ;;  %v16_v2 = vld [vmem:[%s652_s0 + $0x8] sm:$0xff]  ;;  %s538_s1 = smov 2   ;;  %497 = vset.pattern.permute.xlu0 %v539_v27  ;;  %v540_v28 = vmov 4   ;;  %vm466_vm2 = vcmask 1047558   ;;  %vm475_vm3 = vcmask 7174  }
   0x2   :  { %v15_v1 = vld [vmem:[%s652_s0] sm:$0xff]  ;;  %487 = vmatprep.subr.msk.mxu0 %vm28_vm0, %v14_v0  ;;  %v570_v4 = vshrl.u32 %v17_v3, 7  ;;  %s537_s0 = smov 122   ;;  %496 = vset.pattern.permute.xlu1 %v540_v28 }
   0x3   :  { %489 = vmatprep.mubr.msk.f32.mxu0 %vm21_vm1, %v15_v1  ;;  %488 = vmatpush3.msk.msra.mxu0 %vm28_vm0, %v14_v0 }
   0x4   :  { %490 = vmatmul.mubr.msk.f32.vlgmr.msra.gmra.mrb[0].mxu0 %vm21_vm1, %v16_v2  ;;  %v109_v5 = vsub.s32 5, %v570_v4  ;;  %v19_v6 = vsub.s32 7, %v570_v4  ;;  %v113_v7 = vsub.s32 6, %v570_v4 }
   0x6   :  { %v575_v8 = vrot.slane %v14_v0, %v109_v5  ;;  %v20_v9 = vrot.slane %v14_v0, %v19_v6  ;;  %v577_v10 = vrot.slane %v14_v0, %v113_v7 }
   0x8   :  { %v115_v12 = vmul.f32 0.0, %v575_v8  ;;  %v117_v16 = vmul.f32 0.0, %v577_v10 }
  0xd7   :  { %v491_v11 = vpop.f32.mrb[0].mxu0 }
  0xd8   :  { %v580_v13 = vadd.f32 %v491_v11, %v20_v9  ;;  %v98_v14 = vpop.f32.mrb[1].mxu0 }
  0xd9   :  { %v582_v15 = vadd.f32 %v98_v14, %v20_v9 }
  0xdb   :  { %v116_v17 = vadd.f32 %v115_v12, %v582_v15 }
  0xdd   :  { %v118_v18 = vadd.f32 %v117_v16, %v116_v17 }
  0xdf   :  { %505 = vtanh.f32 %v118_v18 }
  0xe9   :  { %v506_v19 = vpop.eup %505 }
  0xea   :  { %124 = vrot.lane.b32.xlu0 %v506_v19, %s537_s0  ;;  %v120_v20 = vadd.f32 1.0, %v506_v19 }
  0xec   :  { %v121_v21 = vmul.f32 0.5, %v120_v20 }
  0xee   :  { %v122_v24 = vmul.f32 0.0, %v121_v21 }
 0x15c   :  { %v125_v22 = vpop.permute.xlu0 %124 }
 0x15d   :  { %v127_v23 = vmul.f32 %v125_v22, %v121_v21 }
 0x15f   :  { %129 = vrot.lane.b32.xlu0 %v127_v23, %s538_s1 }
 0x1d1   :  { %v130_v25 = vpop.permute.xlu0 %129 }
 0x1d2   :  { %v132_v26 = vadd.f32 %v130_v25, %v122_v24 }
 0x1d4   :  { %507 = vtanh.f32 %v132_v26  ;;  %v162_v45 = vrot.slane %v132_v26, 6 }
 0x1de   :  { %v508_v29 = vpop.eup %507 }
 0x1df   :  { %135 = vrot.lane.b32.xlu1 %v508_v29, %s538_s1 }
 0x251   :  { %v136_v30 = vpop.permute.xlu1 %135 }
 0x252   :  { %v138_v31 = vmul.f32 %v136_v30, %v121_v21 }
 0x254   :  { %150 = vperm.xlu0 %497, %v138_v31   ;;  %141 = vperm.xlu1 %496, %v138_v31  }
 0x2d3   :  { %v151_v32 = vpop.permute.xlu0 %150  ;;  %v142_v33 = vpop.permute.xlu1 %141 }
 0x2d4   :  { %v153_v34 = vmul.f32 %v151_v32, %v577_v10  ;;  %v144_v35 = vmul.f32 %v142_v33, %v575_v8 }
 0x2d6   :  { %v146_v36 = vrot.slane %v144_v35, 6  ;;  %v155_v37 = vrot.slane %v153_v34, 6 }
 0x2d8   :  { %v148_v38 = vadd.f32 %v146_v36, %v582_v15 }
 0x2da   :  { %v157_v39 = vadd.f32 %v155_v37, %v148_v38 }
 0x2dc   :  { %509 = vtanh.f32 %v157_v39 }
 0x2e6   :  { %v510_v40 = vpop.eup %509 }
 0x2e7   :  { %166 = vrot.lane.b32.xlu1 %v510_v40, %s537_s0  ;;  %v159_v41 = vadd.f32 1.0, %v510_v40 }
 0x2e9   :  { %v160_v42 = vmul.f32 0.5, %v159_v41 }
 0x2eb   :  { %v164_v46 = vmul.f32 %v162_v45, %v160_v42 }
 0x359   :  { %v167_v43 = vpop.permute.xlu1 %166 }
 0x35a   :  { %v169_v44 = vmul.f32 %v167_v43, %v160_v42 }
 0x35c   :  { %171 = vrot.lane.b32.xlu1 %v169_v44, %s538_s1 }
 0x3ce   :  { %v172_v47 = vpop.permute.xlu1 %171 }
 0x3cf   :  { %v174_v48 = vadd.f32 %v172_v47, %v164_v46 }
 0x3d1   :  { %511 = vtanh.f32 %v174_v48  ;;  %v204_v1 = vrot.slane %v174_v48, 6 }
 0x3db   :  { %v512_v49 = vpop.eup %511 }
 0x3dc   :  { %177 = vrot.lane.b32.xlu0 %v512_v49, %s538_s1 }
 0x44e   :  { %v178_v50 = vpop.permute.xlu0 %177 }
 0x44f   :  { %v180_v51 = vmul.f32 %v178_v50, %v160_v42 }
 0x451   :  { %192 = vperm.xlu0 %497, %v180_v51   ;;  %183 = vperm.xlu1 %496, %v180_v51  }
 0x455   :  { %498 = vset.pattern.permute.xlu0 %v540_v28  ;;  %499 = vset.pattern.permute.xlu1 %v539_v27 }
 0x4d0   :  { %v193_v52 = vpop.permute.xlu0 %192  ;;  %v184_v53 = vpop.permute.xlu1 %183 }
 0x4d1   :  { %v195_v54 = vmul.f32 %v193_v52, %v577_v10  ;;  %v186_v55 = vmul.f32 %v184_v53, %v575_v8 }
 0x4d3   :  { %v188_v56 = vrot.slane %v186_v55, 6  ;;  %v197_v57 = vrot.slane %v195_v54, 6 }
 0x4d5   :  { %v190_v58 = vadd.f32 %v188_v56, %v582_v15 }
 0x4d7   :  { %v199_v59 = vadd.f32 %v197_v57, %v190_v58 }
 0x4d9   :  { %513 = vtanh.f32 %v199_v59 }
 0x4e3   :  { %v514_v60 = vpop.eup %513 }
 0x4e4   :  { %208 = vrot.lane.b32.xlu1 %v514_v60, %s537_s0  ;;  %v201_v61 = vadd.f32 1.0, %v514_v60 }
 0x4e6   :  { %v202_v62 = vmul.f32 0.5, %v201_v61 }
 0x4e8   :  { %v206_v2 = vmul.f32 %v204_v1, %v202_v62 }
 0x556   :  { %v209_v63 = vpop.permute.xlu1 %208 }
 0x557   :  { %v211_v0 = vmul.f32 %v209_v63, %v202_v62 }
 0x559   :  { %213 = vrot.lane.b32.xlu0 %v211_v0, %s538_s1 }
 0x5cb   :  { %v214_v3 = vpop.permute.xlu0 %213 }
 0x5cc   :  { %v216_v5 = vadd.f32 %v214_v3, %v206_v2 }
 0x5ce   :  { %515 = vtanh.f32 %v216_v5  ;;  %v246_v26 = vrot.slane %v216_v5, 6 }
 0x5d8   :  { %v516_v6 = vpop.eup %515 }
 0x5d9   :  { %219 = vrot.lane.b32.xlu1 %v516_v6, %s538_s1 }
 0x64b   :  { %v220_v7 = vpop.permute.xlu1 %219 }
 0x64c   :  { %v222_v9 = vmul.f32 %v220_v7, %v202_v62 }
 0x64e   :  { %234 = vperm.xlu1 %499, %v222_v9   ;;  %225 = vperm.xlu0 %498, %v222_v9  }
 0x6cd   :  { %v235_v11 = vpop.permute.xlu1 %234  ;;  %v226_v12 = vpop.permute.xlu0 %225 }
 0x6ce   :  { %v237_v14 = vmul.f32 %v235_v11, %v577_v10  ;;  %v228_v16 = vmul.f32 %v226_v12, %v575_v8 }
 0x6d0   :  { %v230_v17 = vrot.slane %v228_v16, 6  ;;  %v239_v18 = vrot.slane %v237_v14, 6 }
 0x6d2   :  { %v232_v19 = vadd.f32 %v230_v17, %v582_v15 }
 0x6d4   :  { %v241_v20 = vadd.f32 %v239_v18, %v232_v19 }
 0x6d6   :  { %517 = vtanh.f32 %v241_v20 }
 0x6e0   :  { %v518_v21 = vpop.eup %517 }
 0x6e1   :  { %250 = vrot.lane.b32.xlu1 %v518_v21, %s537_s0  ;;  %v243_v22 = vadd.f32 1.0, %v518_v21 }
 0x6e3   :  { %v244_v23 = vmul.f32 0.5, %v243_v22 }
 0x6e5   :  { %v248_v29 = vmul.f32 %v246_v26, %v244_v23 }
 0x753   :  { %v251_v24 = vpop.permute.xlu1 %250 }
 0x754   :  { %v253_v25 = vmul.f32 %v251_v24, %v244_v23 }
 0x756   :  { %255 = vrot.lane.b32.xlu0 %v253_v25, %s538_s1 }
 0x7c8   :  { %v256_v30 = vpop.permute.xlu0 %255 }
 0x7c9   :  { %v258_v31 = vadd.f32 %v256_v30, %v248_v29 }
 0x7cb   :  { %519 = vtanh.f32 %v258_v31  ;;  %v288_v47 = vrot.slane %v258_v31, 6 }
 0x7d5   :  { %v520_v32 = vpop.eup %519 }
 0x7d6   :  { %261 = vrot.lane.b32.xlu1 %v520_v32, %s538_s1 }
 0x848   :  { %v262_v15 = vpop.permute.xlu1 %261 }
 0x849   :  { %v264_v33 = vmul.f32 %v262_v15, %v244_v23 }
 0x84b   :  { %276 = vperm.xlu1 %499, %v264_v33   ;;  %267 = vperm.xlu0 %498, %v264_v33  }
 0x84f   :  { %500 = vset.pattern.permute.xlu1 %v540_v28  ;;  %501 = vset.pattern.permute.xlu0 %v539_v27 }
 0x8ca   :  { %v277_v34 = vpop.permute.xlu1 %276  ;;  %v268_v35 = vpop.permute.xlu0 %267 }
 0x8cb   :  { %v279_v36 = vmul.f32 %v277_v34, %v577_v10  ;;  %v270_v37 = vmul.f32 %v268_v35, %v575_v8 }
 0x8cd   :  { %v272_v38 = vrot.slane %v270_v37, 6  ;;  %v281_v39 = vrot.slane %v279_v36, 6 }
 0x8cf   :  { %v274_v40 = vadd.f32 %v272_v38, %v580_v13 }
 0x8d1   :  { %v283_v41 = vadd.f32 %v281_v39, %v274_v40 }
 0x8d3   :  { %521 = vtanh.f32 %v283_v41 }
 0x8dd   :  { %v522_v42 = vpop.eup %521 }
 0x8de   :  { %292 = vrot.lane.b32.xlu0 %v522_v42, %s537_s0  ;;  %v285_v43 = vadd.f32 1.0, %v522_v42 }
 0x8e0   :  { %v286_v44 = vmul.f32 0.5, %v285_v43 }
 0x8e2   :  { %v290_v48 = vmul.f32 %v288_v47, %v286_v44 }
 0x950   :  { %v293_v45 = vpop.permute.xlu0 %292 }
 0x951   :  { %v295_v46 = vmul.f32 %v293_v45, %v286_v44 }
 0x953   :  { %297 = vrot.lane.b32.xlu1 %v295_v46, %s538_s1 }
 0x9c5   :  { %v298_v49 = vpop.permute.xlu1 %297 }
 0x9c6   :  { %v300_v50 = vadd.f32 %v298_v49, %v290_v48 }
 0x9c8   :  { %523 = vtanh.f32 %v300_v50  ;;  %v330_v3 = vrot.slane %v300_v50, 6 }
 0x9d2   :  { %v524_v51 = vpop.eup %523 }
 0x9d3   :  { %303 = vrot.lane.b32.xlu0 %v524_v51, %s538_s1 }
 0xa45   :  { %v304_v52 = vpop.permute.xlu0 %303 }
 0xa46   :  { %v306_v53 = vmul.f32 %v304_v52, %v286_v44 }
 0xa48   :  { %318 = vperm.xlu0 %501, %v306_v53   ;;  %309 = vperm.xlu1 %500, %v306_v53   ;;  %v451_v53 = vsub.s32 1, %v570_v4 }
 0xac7   :  { %v319_v54 = vpop.permute.xlu0 %318  ;;  %v310_v55 = vpop.permute.xlu1 %309 }
 0xac8   :  { %v321_v56 = vmul.f32 %v319_v54, %v577_v10  ;;  %v312_v57 = vmul.f32 %v310_v55, %v575_v8  ;;  %v442_v54 = vsub.s32 0, %v570_v4  ;;  %v433_v55 = vld [vmem:[%s653_s2] sm:$0x1f] }
 0xaca   :  { %v314_v58 = vrot.slane %v312_v57, 6  ;;  %v323_v59 = vrot.slane %v321_v56, 6  ;;  %v452_v56 = vrot.slane %v433_v55, %v451_v53  ;;  %v443_v57 = vrot.slane %v433_v55, %v442_v54 }
 0xacc   :  { %v316_v60 = vadd.f32 %v314_v58, %v580_v13  ;;  %v457_v58 = vsub.s32 2, %v570_v4 }
 0xace   :  { %v325_v61 = vadd.f32 %v323_v59, %v316_v60 }
 0xad0   :  { %525 = vtanh.f32 %v325_v61 }
 0xada   :  { %v526_v62 = vpop.eup %525 }
 0xadb   :  { %334 = vrot.lane.b32.xlu1 %v526_v62, %s537_s0  ;;  %v327_v63 = vadd.f32 1.0, %v526_v62  ;;  %v458_v62 = vrot.slane %v433_v55, %v457_v58 }
 0xadd   :  { %v328_v0 = vmul.f32 0.5, %v327_v63 }
 0xadf   :  { %v332_v5 = vmul.f32 %v330_v3, %v328_v0 }
 0xb4d   :  { %v335_v1 = vpop.permute.xlu1 %334 }
 0xb4e   :  { %v337_v2 = vmul.f32 %v335_v1, %v328_v0 }
 0xb50   :  { %339 = vrot.lane.b32.xlu1 %v337_v2, %s538_s1 }
 0xbc2   :  { %v340_v6 = vpop.permute.xlu1 %339 }
 0xbc3   :  { %v342_v7 = vadd.f32 %v340_v6, %v332_v5 }
 0xbc5   :  { %527 = vtanh.f32 %v342_v7  ;;  %v372_v29 = vrot.slane %v342_v7, 6  ;;  %v472_v7 = vsub.s32 4, %v570_v4 }
 0xbcf   :  { %v528_v9 = vpop.eup %527 }
 0xbd0   :  { %345 = vrot.lane.b32.xlu0 %v528_v9, %s538_s1  ;;  %v473_v9 = vrot.slane %v433_v55, %v472_v7 }
 0xc42   :  { %v346_v11 = vpop.permute.xlu0 %345 }
 0xc43   :  { %v348_v12 = vmul.f32 %v346_v11, %v328_v0  ;;  %v463_v0 = vsub.s32 3, %v570_v4 }
 0xc45   :  { %360 = vperm.xlu0 %501, %v348_v12   ;;  %351 = vperm.xlu1 %500, %v348_v12   ;;  %v464_v2 = vrot.slane %v433_v55, %v463_v0 }
 0xc49   :  { %502 = vset.pattern.permute.xlu0 %v540_v28  ;;  %503 = vset.pattern.permute.xlu1 %v539_v27 }
 0xcc4   :  { %v361_v14 = vpop.permute.xlu0 %360  ;;  %v352_v16 = vpop.permute.xlu1 %351 }
 0xcc5   :  { %v363_v17 = vmul.f32 %v361_v14, %v577_v10  ;;  %v354_v18 = vmul.f32 %v352_v16, %v575_v8 }
 0xcc7   :  { %v356_v19 = vrot.slane %v354_v18, 6  ;;  %v365_v20 = vrot.slane %v363_v17, 6 }
 0xcc9   :  { %v358_v21 = vadd.f32 %v356_v19, %v580_v13 }
 0xccb   :  { %v367_v22 = vadd.f32 %v365_v20, %v358_v21 }
 0xccd   :  { %529 = vtanh.f32 %v367_v22 }
 0xcd7   :  { %v530_v23 = vpop.eup %529 }
 0xcd8   :  { %376 = vrot.lane.b32.xlu1 %v530_v23, %s537_s0  ;;  %v369_v24 = vadd.f32 1.0, %v530_v23 }
 0xcda   :  { %v370_v25 = vmul.f32 0.5, %v369_v24 }
 0xcdc   :  { %v374_v30 = vmul.f32 %v372_v29, %v370_v25 }
 0xd4a   :  { %v377_v28 = vpop.permute.xlu1 %376 }
 0xd4b   :  { %v379_v26 = vmul.f32 %v377_v28, %v370_v25 }
 0xd4d   :  { %381 = vrot.lane.b32.xlu0 %v379_v26, %s538_s1 }
 0xdbf   :  { %v382_v31 = vpop.permute.xlu0 %381 }
 0xdc0   :  { %v384_v32 = vadd.f32 %v382_v31, %v374_v30 }
 0xdc2   :  { %531 = vtanh.f32 %v384_v32  ;;  %v414_v48 = vrot.slane %v384_v32, 6 }
 0xdcc   :  { %v532_v15 = vpop.eup %531 }
 0xdcd   :  { %387 = vrot.lane.b32.xlu1 %v532_v15, %s538_s1 }
 0xe3f   :  { %v388_v33 = vpop.permute.xlu1 %387 }
 0xe40   :  { %v390_v34 = vmul.f32 %v388_v33, %v370_v25 }
 0xe42   :  { %402 = vperm.xlu1 %503, %v390_v34   ;;  %393 = vperm.xlu0 %502, %v390_v34  }
 0xec1   :  { %v403_v35 = vpop.permute.xlu1 %402  ;;  %v394_v36 = vpop.permute.xlu0 %393 }
 0xec2   :  { %v405_v37 = vmul.f32 %v403_v35, %v577_v10  ;;  %v396_v38 = vmul.f32 %v394_v36, %v575_v8 }
 0xec4   :  { %v398_v39 = vrot.slane %v396_v38, 6  ;;  %v407_v40 = vrot.slane %v405_v37, 6 }
 0xec6   :  { %v400_v41 = vadd.f32 %v398_v39, %v580_v13 }
 0xec8   :  { %v409_v42 = vadd.f32 %v407_v40, %v400_v41 }
 0xeca   :  { %533 = vtanh.f32 %v409_v42 }
 0xed4   :  { %v534_v43 = vpop.eup %533 }
 0xed5   :  { %418 = vrot.lane.b32.xlu1 %v534_v43, %s537_s0  ;;  %v411_v44 = vadd.f32 1.0, %v534_v43 }
 0xed7   :  { %v412_v45 = vmul.f32 0.5, %v411_v44 }
 0xed9   :  { %v416_v49 = vmul.f32 %v414_v48, %v412_v45 }
 0xf47   :  { %v419_v46 = vpop.permute.xlu1 %418 }
 0xf48   :  { %v421_v47 = vmul.f32 %v419_v46, %v412_v45 }
 0xf4a   :  { %423 = vrot.lane.b32.xlu0 %v421_v47, %s538_s1 }
 0xfbc   :  { %v424_v10 = vpop.permute.xlu0 %423 }
 0xfbd   :  { %v426_v50 = vadd.f32 %v424_v10, %v416_v49 }
 0xfbf   :  { %535 = vtanh.f32 %v426_v50 }
 0xfc9   :  { %v536_v8 = vpop.eup %535 }
 0xfca   :  { %429 = vrot.lane.b32.xlu1 %v536_v8, %s538_s1 }
0x103c   :  { %v430_v13 = vpop.permute.xlu1 %429 }
0x103d   :  { %v432_v51 = vmul.f32 %v430_v13, %v412_v45 }
0x103f   :  { %v434_v52 = vmax.f32 %v432_v51, 0.0 }
0x1041   :  { %446 = vperm.xlu1 %503, %v434_v52   ;;  %437 = vperm.xlu0 %502, %v434_v52  }
0x1045   :  { %504 = vset.pattern.permute.xlu0 %v539_v27 }
0x10c0   :  { %v447_v59 = vpop.permute.xlu1 %446  ;;  %v438_v60 = vpop.permute.xlu0 %437 }
0x10c1   :  { %v453_v61 = vmul.f32 %v452_v56, %v447_v59  ;;  %v444_v63 = vmul.f32 %v443_v57, %v438_v60 }
0x10c3   :  { %v454_v27 = vadd.f32 %v453_v61, %v444_v63 }
0x10c5   :  { %v459_v1 = vadd.f32 %v458_v62, %v454_v27 }
0x10c7   :  { %v460_v3 = vmax.f32 %v459_v1, 0.0 }
0x10c9   :  { %v465_v5 = vmul.f32 %v464_v2, %v460_v3 }
0x10cb   :  { %v467_v6 = vsel %vm466_vm2, %v465_v5, 0.0 }
0x10cc   :  { %468 = vadd.xlane.f32.xlu0 %v467_v6 }
0x1159   :  { %v469_v11 = vpop.xlane.xlu0 %468 }
0x115a   :  { %v474_v12 = vadd.f32 %v473_v9, %v469_v11 }
0x115c   :  { %476 = vst.msk [vmem:[%s654_s3 - $0x6] sm:$0xc0] %vm475_vm3, %v474_v12 }

</bundles_post_ra>
